<compile_context>
chip_gen: v7x
topology: tpu7x:2x2x1
jax: 0.10.0
libtpu: 0.0.40
codegen_flags: <defaults>
</compile_context>

<pallas_src>
import functools

import jax
import jax.numpy as jnp
from jax import lax
from jax.experimental import pallas as pl
from jax.experimental.pallas import tpu as pltpu


_EXPAND_BUDGET_BYTES = 2 * 1024 * 1024   # max size of the on-chip replication matrix


def _pad8(n):
    return ((n + 7) // 8) * 8


@functools.lru_cache(maxsize=None)
def _vmem_capacity_bytes():
    """Physical VMEM of the attached TPU (one-time capability probe)."""
    try:
        return int(pltpu.get_tpu_info().vmem_capacity_bytes)
    except Exception:
        return 64 * 1024 * 1024          # conservative (v7x-sized) fallback


def _const_spec(shape, index_map):
    """BlockSpec for a grid-invariant operand; single-buffered when supported."""
    try:
        return pl.BlockSpec(shape, index_map,
                            pipeline_mode=pl.Buffered(buffer_count=1))
    except TypeError:                     # older BlockSpec without pipeline_mode
        return pl.BlockSpec(shape, index_map)


def _mm(a, b):
    """Canonical MXU matmul [M,K] @ [K,N] -> [M,N], f32 accumulation."""
    return lax.dot_general(a, b, (((1,), (0,)), ((), ())),
                           preferred_element_type=jnp.float32)


def _inf_cube(x):
    """inf_cube over the feature axis (axis 0 of the [feature, rows] layout)."""
    c = x * x * x
    n = jnp.maximum(jnp.max(jnp.abs(c), axis=0, keepdims=True), 1e-38)
    # EUP approximate reciprocal on the narrow [1, rows] vector (+ one Newton
    # step for ~f32 accuracy); the wide [feat, rows] tile only sees a multiply.
    r = pl.reciprocal(n, approx=True)
    r = r * (2.0 - n * r)
    return c * r


def head_kernel(act_ref, dat_ref, exp_ref, w0a_ref, w0d_ref, b0_ref,
                wm_ref, bm_ref, wout_ref, bout_ref, out_ref,
                *, num_submodules, rows_per_data, out_via_reduce):
    act = act_ref[...]                    # [dl, tile_m]  (rows on the lane axis)
    dat_small = dat_ref[...]              # [dr, tz]      (un-replicated data)

    if rows_per_data == 1:
        dat = dat_small                                  # already one col per row
        zd = _mm(w0d_ref[...], dat)
    else:
        # Expand each data column over its rows_per_data activation columns via
        # a 0/1 replication matrix (exact column copies) on the MXU; the W0d
        # matmul runs on the small block first (rows_per_data x less MXU work).
        expand = exp_ref[...]                            # [tz, tile_m]
        zd_small = _mm(w0d_ref[...], dat_small)          # [dr, tz]
        dat = _mm(dat_small, expand)                     # [dr, tile_m]
        zd = _mm(zd_small, expand)                       # [dr, tile_m]

    # Initial InfCube on cat([act, dat]); W0 is pre-split so that
    # W0 @ cat([a; d]) == W0[:, :dl] @ a + W0[:, dl:] @ d.
    z = _mm(w0a_ref[...], act) + zd + b0_ref[...]
    h = _inf_cube(z) + dat

    if num_submodules <= 6:
        for i in range(num_submodules):                  # static unroll
            h = _inf_cube(_mm(wm_ref[i], h) + bm_ref[i]) + h
    else:
        def body(i, hh):                                 # bounds vreg live ranges
            return _inf_cube(_mm(wm_ref[i], hh) + bm_ref[i]) + hh
        h = lax.fori_loop(0, num_submodules, body, h, unroll=2)

    if out_via_reduce:
        # dim_out == 1: lane-dense multiply + sublane reduce instead of a
        # degenerate (M=1) MXU matmul.  wout_ref is [dr, 1].
        out_ref[...] = (jnp.sum(wout_ref[...] * h, axis=0, keepdims=True)
                        + bout_ref[...])
    else:
        out_ref[...] = _mm(wout_ref[...], h) + bout_ref[...]


def _plan_tiles(Z, R, rows_cap, want_multi):
    """Tile the data columns.  Z data columns, R activation columns per data
    column.  Multi-step tiling needs the data block's lane dim (tz) to be a
    multiple of 128 (which also makes tile_m = tz*R a multiple of 128)."""
    M = Z * R
    step = 128
    if Z <= step or (M <= rows_cap and not want_multi):
        return Z, 1                                      # single step, full blocks
    tz_cap = max(step, ((rows_cap // R) // step) * step)
    half = ((Z + 1) // 2 + step - 1) // step * step      # aim for >= 2 grid steps
    tz = max(step, min(tz_cap, half))
    n_steps = -(-Z // tz)
    return tz, n_steps


def _head_forward_impl(action_data, data, params, *, target_rows=None):
    dz, db, dl = action_data.shape
    dz2, dr = data.shape
    assert dz2 == dz
    dim_out = params["Wout"].shape[0]
    num_sub = params["Wm"].shape[0]
    M = dz * db
    f32 = jnp.float32

    # Generation-aware budgets (v5e/v6e: 128 MiB physical VMEM; v7x: 64 MiB).
    if _vmem_capacity_bytes() >= 100 * 1024 * 1024:
        vmem_limit, rows_cap = 100 * 1024 * 1024, 4096
    else:
        vmem_limit, rows_cap = 44 * 1024 * 1024, 2048
    if target_rows is not None:
        rows_cap = max(int(target_rows), 128)
    # Crude per-column VMEM estimate (double-buffered act/dat/out blocks plus
    # ~6 live [dr, tile_m] f32 temporaries) keeps very large dr/dl from OOMing.
    per_col = 4 * (2 * _pad8(dl) + 8 * _pad8(dr) + 2 * _pad8(dim_out))
    rows_cap = min(rows_cap,
                   max(128, ((vmem_limit // 2) // per_col) // 128 * 128))
    want_multi = M >= 512     # >=2 grid steps so both v7x TensorCores get work

    # In the transposed layout the PyTorch [out, in] weights are already the
    # canonical MXU lhs -> no transposes, in-kernel or in the wrapper.
    act_t = action_data.reshape(M, dl).T.astype(f32)          # [dl, M]
    W0 = params["W0"].astype(f32)
    w0a, w0d = W0[:, :dl], W0[:, dl:]                         # [dr, dl], [dr, dr]
    b0 = params["b0"].reshape(dr, 1).astype(f32)
    wm = params["Wm"].astype(f32)                             # [num_sub, dr, dr]
    bm = params["bm"].reshape(num_sub, dr, 1).astype(f32)
    bout = params["bout"].reshape(dim_out, 1).astype(f32)
    out_via_reduce = dim_out == 1
    wout = (params["Wout"].T if out_via_reduce else params["Wout"]).astype(f32)

    # Static choice of data-replication strategy (no try/except dispatch).
    use_onchip = db > 1
    if use_onchip:
        tz, n_steps = _plan_tiles(dz, db, rows_cap, want_multi)
        tile_m = tz * db
        use_onchip = (tz * tile_m * 4 <= _EXPAND_BUDGET_BYTES
                      and tile_m <= 2 * rows_cap)
    if use_onchip:
        R = db
        dat_t = data.T.astype(f32)                            # [dr, dz]
        expand = jnp.repeat(jnp.eye(tz, dtype=f32), R, axis=1)   # [tz, tz*R]
    else:
        R = 1
        tz, n_steps = _plan_tiles(M, 1, rows_cap, want_multi)
        tile_m = tz
        dat_t = jnp.broadcast_to(data.astype(f32)[:, None, :],
                                 (dz, db, dr)).reshape(M, dr).T   # [dr, M]
        expand = jnp.ones((1, 1), f32)                        # unused dummy

    Z = dat_t.shape[1]
    Zp = n_steps * tz
    Mp = Zp * R
    if Mp > M:      # pad rows with 1.0 (harmless, sliced off afterwards)
        act_t = jnp.pad(act_t, ((0, 0), (0, Mp - M)), constant_values=1.0)
    if Zp > Z:
        dat_t = jnp.pad(dat_t, ((0, 0), (0, Zp - Z)), constant_values=1.0)

    kern = functools.partial(head_kernel, num_submodules=num_sub,
                             rows_per_data=R, out_via_reduce=out_via_reduce)

    out_t = pl.pallas_call(
        kern,
        out_shape=jax.ShapeDtypeStruct((dim_out, Mp), f32),
        grid_spec=pltpu.PrefetchScalarGridSpec(
            num_scalar_prefetch=0,
            grid=(n_steps,),
            in_specs=[
                pl.BlockSpec((dl, tile_m), lambda i: (0, i)),   # activations
                pl.BlockSpec((dr, tz), lambda i: (0, i)),       # data (per-tile)
                _const_spec(expand.shape, lambda i: (0, 0)),    # replication matrix
                _const_spec((dr, dl), lambda i: (0, 0)),        # W0[:, :dl]
                _const_spec((dr, dr), lambda i: (0, 0)),        # W0[:, dl:]
                _const_spec((dr, 1), lambda i: (0, 0)),         # b0
                _const_spec((num_sub, dr, dr), lambda i: (0, 0, 0)),  # Wm stack
                _const_spec((num_sub, dr, 1), lambda i: (0, 0, 0)),   # bm stack
                _const_spec(wout.shape, lambda i: (0, 0)),      # Wout (or Wout.T)
                _const_spec((dim_out, 1), lambda i: (0, 0)),    # bout
            ],
            out_specs=pl.BlockSpec((dim_out, tile_m), lambda i: (0, i)),
        ),
        compiler_params=pltpu.CompilerParams(
            dimension_semantics=("parallel",),
            vmem_limit_bytes=vmem_limit,
        ),
    )(act_t, dat_t, expand, w0a, w0d, b0, wm, bm, wout, bout)

    out = out_t[:, :M].T.reshape(dz, db, dim_out)
    # torch .squeeze(-1): only squeezes when the size is 1
    return out[..., 0] if dim_out == 1 else out


head_forward = jax.jit(_head_forward_impl, static_argnames=("target_rows",))


def head_ref(action_data, data, params):
    """Pure-JAX reference mirroring the PyTorch forward exactly."""
    dz, db, dl = action_data.shape
    dr = data.shape[-1]
    datb = jnp.broadcast_to(data[:, None, :], (dz, db, dr))
    x = jnp.concatenate([action_data, datb], -1)

    def ic(v):
        c = v ** 3
        n = jnp.maximum(jnp.max(jnp.abs(c), axis=-1, keepdims=True), 1e-38)
        return c / n

    h = ic(x @ params["W0"].T + params["b0"]) + datb
    for i in range(params["Wm"].shape[0]):
        h = ic(h @ params["Wm"][i].T + params["bm"][i]) + h
    out = h @ params["Wout"].T + params["bout"]
    return out[..., 0] if out.shape[-1] == 1 else out


def init_params(key, dim_action, dim_in, dim_out, num_submodules):
    """Deterministic synthetic init (PyTorch-Linear-style uniform ranges)."""
    ks = jax.random.split(key, 3)

    def lin(k, out_f, in_f):
        scale = 1.0 / float(in_f) ** 0.5
        kw, kb = jax.random.split(k)
        W = jax.random.uniform(kw, (out_f, in_f), jnp.float32, -scale, scale)
        b = jax.random.uniform(kb, (out_f,), jnp.float32, -scale, scale)
        return W, b

    W0, b0 = lin(ks[0], dim_in, dim_action + dim_in)
    Wm_l, bm_l = [], []
    for i in range(num_submodules):
        W, b = lin(jax.random.fold_in(ks[1], i), dim_in, dim_in)
        Wm_l.append(W)
        bm_l.append(b)
    Wout, bout = lin(ks[2], dim_out, dim_in)
    return {"W0": W0, "b0": b0,
            "Wm": jnp.stack(Wm_l), "bm": jnp.stack(bm_l),
            "Wout": Wout, "bout": bout}


if __name__ == "__main__":
    # Shapes per Head.forward: action_data [dz, db, dim_action], data [dz, dim_in]
    dz, db = 2, 8
    dim_action, dim_in, dim_out = 8, 32, 1
    num_submodules = 2

    key = jax.random.PRNGKey(0)
    k_act, k_dat, k_par = jax.random.split(key, 3)

    action_data = jax.random.normal(k_act, (dz, db, dim_action), jnp.float32)
    data = jax.random.normal(k_dat, (dz, dim_in), jnp.float32)
    params = init_params(k_par, dim_action, dim_in, dim_out, num_submodules)

    out = jax.block_until_ready(head_forward(action_data, data, params))

    ref = head_ref(action_data, data, params)
    assert out.shape == (dz, db), out.shape
    # EUP approx-reciprocal (+ one Newton step) is the only intentional
    # numerical deviation from the f32 reference; keep a tight-but-safe bound.
    assert jnp.allclose(out, ref, atol=2e-4, rtol=2e-4), (out, ref)

    print("KERNEL_OK")
</pallas_src>

<mosaic_0001>
module attributes {stable_mosaic.version = 11 : i64} {
  func.func @head_kernel(%arg0: i32, %arg1: memref<8x16xf32, #tpu.memory_space<vmem>>, %arg2: memref<32x2xf32, #tpu.memory_space<vmem>>, %arg3: memref<2x16xf32, #tpu.memory_space<vmem>>, %arg4: memref<32x8xf32, #tpu.memory_space<vmem>>, %arg5: memref<32x32xf32, #tpu.memory_space<vmem>>, %arg6: memref<32x1xf32, #tpu.memory_space<vmem>>, %arg7: memref<2x32x32xf32, #tpu.memory_space<vmem>>, %arg8: memref<2x32x1xf32, #tpu.memory_space<vmem>>, %arg9: memref<32x1xf32, #tpu.memory_space<vmem>>, %arg10: memref<1x1xf32, #tpu.memory_space<vmem>>, %arg11: memref<1x16xf32, #tpu.memory_space<vmem>>) attributes {dimension_semantics = [#tpu.dimension_semantics<parallel>], iteration_bounds = array<i64: 1>, scalar_prefetch = 0 : i64, scratch_operands = 0 : i64, tpu.core_type = #tpu.core_type<tc>, window_params = [{transform_indices = @transform_0, window_bounds = array<i64: 8, 16>}, {transform_indices = @transform_1, window_bounds = array<i64: 32, 2>}, {pipeline_mode = #tpu.pipeline_mode<synchronous>, transform_indices = @transform_2, window_bounds = array<i64: 2, 16>}, {pipeline_mode = #tpu.pipeline_mode<synchronous>, transform_indices = @transform_3, window_bounds = array<i64: 32, 8>}, {pipeline_mode = #tpu.pipeline_mode<synchronous>, transform_indices = @transform_4, window_bounds = array<i64: 32, 32>}, {pipeline_mode = #tpu.pipeline_mode<synchronous>, transform_indices = @transform_5, window_bounds = array<i64: 32, 1>}, {pipeline_mode = #tpu.pipeline_mode<synchronous>, transform_indices = @transform_6, window_bounds = array<i64: 2, 32, 32>}, {pipeline_mode = #tpu.pipeline_mode<synchronous>, transform_indices = @transform_7, window_bounds = array<i64: 2, 32, 1>}, {pipeline_mode = #tpu.pipeline_mode<synchronous>, transform_indices = @transform_8, window_bounds = array<i64: 32, 1>}, {pipeline_mode = #tpu.pipeline_mode<synchronous>, transform_indices = @transform_9, window_bounds = array<i64: 1, 1>}, {transform_indices = @transform_10, window_bounds = array<i64: 1, 16>}]} {
    %c0 = arith.constant 0 : index
    %c0_0 = arith.constant 0 : index
    %0 = vector.load %arg1[%c0, %c0_0] : memref<8x16xf32, #tpu.memory_space<vmem>>, vector<8x16xf32>
    %c0_1 = arith.constant 0 : index
    %c0_2 = arith.constant 0 : index
    %1 = vector.load %arg2[%c0_1, %c0_2] : memref<32x2xf32, #tpu.memory_space<vmem>>, vector<32x2xf32>
    %c0_3 = arith.constant 0 : index
    %c0_4 = arith.constant 0 : index
    %2 = vector.load %arg3[%c0_3, %c0_4] : memref<2x16xf32, #tpu.memory_space<vmem>>, vector<2x16xf32>
    %c0_5 = arith.constant 0 : index
    %c0_6 = arith.constant 0 : index
    %3 = vector.load %arg5[%c0_5, %c0_6] : memref<32x32xf32, #tpu.memory_space<vmem>>, vector<32x32xf32>
    %cst = arith.constant dense<0.000000e+00> : vector<32x2xf32>
    %4 = tpu.matmul %3, %1, %cst {dimension_numbers = #tpu.dot_dimension_numbers<[1], [0], [0], [1], [0, 0, 1, 1], [], []>} : vector<32x32xf32>, vector<32x2xf32>, vector<32x2xf32> -> vector<32x2xf32>
    %cst_7 = arith.constant dense<0.000000e+00> : vector<32x16xf32>
    %5 = tpu.matmul %1, %2, %cst_7 {dimension_numbers = #tpu.dot_dimension_numbers<[1], [0], [0], [1], [0, 0, 1, 1], [], []>} : vector<32x2xf32>, vector<2x16xf32>, vector<32x16xf32> -> vector<32x16xf32>
    %cst_8 = arith.constant dense<0.000000e+00> : vector<32x16xf32>
    %6 = tpu.matmul %4, %2, %cst_8 {dimension_numbers = #tpu.dot_dimension_numbers<[1], [0], [0], [1], [0, 0, 1, 1], [], []>} : vector<32x2xf32>, vector<2x16xf32>, vector<32x16xf32> -> vector<32x16xf32>
    %c0_9 = arith.constant 0 : index
    %c0_10 = arith.constant 0 : index
    %7 = vector.load %arg4[%c0_9, %c0_10] : memref<32x8xf32, #tpu.memory_space<vmem>>, vector<32x8xf32>
    %cst_11 = arith.constant dense<0.000000e+00> : vector<32x16xf32>
    %8 = tpu.matmul %7, %0, %cst_11 {dimension_numbers = #tpu.dot_dimension_numbers<[1], [0], [0], [1], [0, 0, 1, 1], [], []>} : vector<32x8xf32>, vector<8x16xf32>, vector<32x16xf32> -> vector<32x16xf32>
    %9 = arith.addf %8, %6 : vector<32x16xf32>
    %c0_12 = arith.constant 0 : index
    %c0_13 = arith.constant 0 : index
    %10 = vector.load %arg6[%c0_12, %c0_13] : memref<32x1xf32, #tpu.memory_space<vmem>>, vector<32x1xf32>
    %11 = vector.broadcast %10 : vector<32x1xf32> to vector<32x16xf32>
    %12 = arith.addf %9, %11 : vector<32x16xf32>
    %13 = arith.mulf %12, %12 : vector<32x16xf32>
    %14 = arith.mulf %13, %12 : vector<32x16xf32>
    %15 = math.absf %14 : vector<32x16xf32>
    %cst_14 = arith.constant dense<0xFF800000> : vector<16xf32>
    %16 = vector.multi_reduction <maximumf>, %15, %cst_14 [0] : vector<32x16xf32> to vector<16xf32>
    %17 = vector.shape_cast %16 : vector<16xf32> to vector<1x16xf32>
    %cst_15 = arith.constant 9.99999935E-39 : f32
    %18 = vector.broadcast %cst_15 : f32 to vector<1x16xf32>
    %19 = arith.maximumf %17, %18 : vector<1x16xf32>
    %20 = tpu.reciprocal %19 {approx = true} : vector<1x16xf32> -> vector<1x16xf32>
    %21 = arith.mulf %19, %20 : vector<1x16xf32>
    %cst_16 = arith.constant 2.000000e+00 : f32
    %22 = vector.broadcast %cst_16 : f32 to vector<1x16xf32>
    %23 = arith.subf %22, %21 : vector<1x16xf32>
    %24 = arith.mulf %20, %23 : vector<1x16xf32>
    %25 = vector.broadcast %24 : vector<1x16xf32> to vector<32x16xf32>
    %26 = arith.mulf %14, %25 : vector<32x16xf32>
    %27 = arith.addf %26, %5 : vector<32x16xf32>
    %c0_17 = arith.constant 0 : index
    %c0_18 = arith.constant 0 : index
    %c0_19 = arith.constant 0 : index
    %28 = vector.load %arg7[%c0_17, %c0_18, %c0_19] : memref<2x32x32xf32, #tpu.memory_space<vmem>>, vector<1x32x32xf32>
    %29 = vector.shape_cast %28 : vector<1x32x32xf32> to vector<32x32xf32>
    %cst_20 = arith.constant dense<0.000000e+00> : vector<32x16xf32>
    %30 = tpu.matmul %29, %27, %cst_20 {dimension_numbers = #tpu.dot_dimension_numbers<[1], [0], [0], [1], [0, 0, 1, 1], [], []>} : vector<32x32xf32>, vector<32x16xf32>, vector<32x16xf32> -> vector<32x16xf32>
    %c0_21 = arith.constant 0 : index
    %c0_22 = arith.constant 0 : index
    %c0_23 = arith.constant 0 : index
    %31 = vector.load %arg8[%c0_21, %c0_22, %c0_23] : memref<2x32x1xf32, #tpu.memory_space<vmem>>, vector<1x32x1xf32>
    %32 = vector.shape_cast %31 : vector<1x32x1xf32> to vector<32x1xf32>
    %33 = vector.broadcast %32 : vector<32x1xf32> to vector<32x16xf32>
    %34 = arith.addf %30, %33 : vector<32x16xf32>
    %35 = arith.mulf %34, %34 : vector<32x16xf32>
    %36 = arith.mulf %35, %34 : vector<32x16xf32>
    %37 = math.absf %36 : vector<32x16xf32>
    %cst_24 = arith.constant dense<0xFF800000> : vector<16xf32>
    %38 = vector.multi_reduction <maximumf>, %37, %cst_24 [0] : vector<32x16xf32> to vector<16xf32>
    %39 = vector.shape_cast %38 : vector<16xf32> to vector<1x16xf32>
    %cst_25 = arith.constant 9.99999935E-39 : f32
    %40 = vector.broadcast %cst_25 : f32 to vector<1x16xf32>
    %41 = arith.maximumf %39, %40 : vector<1x16xf32>
    %42 = tpu.reciprocal %41 {approx = true} : vector<1x16xf32> -> vector<1x16xf32>
    %43 = arith.mulf %41, %42 : vector<1x16xf32>
    %cst_26 = arith.constant 2.000000e+00 : f32
    %44 = vector.broadcast %cst_26 : f32 to vector<1x16xf32>
    %45 = arith.subf %44, %43 : vector<1x16xf32>
    %46 = arith.mulf %42, %45 : vector<1x16xf32>
    %47 = vector.broadcast %46 : vector<1x16xf32> to vector<32x16xf32>
    %48 = arith.mulf %36, %47 : vector<32x16xf32>
    %49 = arith.addf %48, %27 : vector<32x16xf32>
    %c1 = arith.constant 1 : index
    %c0_27 = arith.constant 0 : index
    %c0_28 = arith.constant 0 : index
    %50 = vector.load %arg7[%c1, %c0_27, %c0_28] : memref<2x32x32xf32, #tpu.memory_space<vmem>>, vector<1x32x32xf32>
    %51 = vector.shape_cast %50 : vector<1x32x32xf32> to vector<32x32xf32>
    %cst_29 = arith.constant dense<0.000000e+00> : vector<32x16xf32>
    %52 = tpu.matmul %51, %49, %cst_29 {dimension_numbers = #tpu.dot_dimension_numbers<[1], [0], [0], [1], [0, 0, 1, 1], [], []>} : vector<32x32xf32>, vector<32x16xf32>, vector<32x16xf32> -> vector<32x16xf32>
    %c1_30 = arith.constant 1 : index
    %c0_31 = arith.constant 0 : index
    %c0_32 = arith.constant 0 : index
    %53 = vector.load %arg8[%c1_30, %c0_31, %c0_32] : memref<2x32x1xf32, #tpu.memory_space<vmem>>, vector<1x32x1xf32>
    %54 = vector.shape_cast %53 : vector<1x32x1xf32> to vector<32x1xf32>
    %55 = vector.broadcast %54 : vector<32x1xf32> to vector<32x16xf32>
    %56 = arith.addf %52, %55 : vector<32x16xf32>
    %57 = arith.mulf %56, %56 : vector<32x16xf32>
    %58 = arith.mulf %57, %56 : vector<32x16xf32>
    %59 = math.absf %58 : vector<32x16xf32>
    %cst_33 = arith.constant dense<0xFF800000> : vector<16xf32>
    %60 = vector.multi_reduction <maximumf>, %59, %cst_33 [0] : vector<32x16xf32> to vector<16xf32>
    %61 = vector.shape_cast %60 : vector<16xf32> to vector<1x16xf32>
    %cst_34 = arith.constant 9.99999935E-39 : f32
    %62 = vector.broadcast %cst_34 : f32 to vector<1x16xf32>
    %63 = arith.maximumf %61, %62 : vector<1x16xf32>
    %64 = tpu.reciprocal %63 {approx = true} : vector<1x16xf32> -> vector<1x16xf32>
    %65 = arith.mulf %63, %64 : vector<1x16xf32>
    %cst_35 = arith.constant 2.000000e+00 : f32
    %66 = vector.broadcast %cst_35 : f32 to vector<1x16xf32>
    %67 = arith.subf %66, %65 : vector<1x16xf32>
    %68 = arith.mulf %64, %67 : vector<1x16xf32>
    %69 = vector.broadcast %68 : vector<1x16xf32> to vector<32x16xf32>
    %70 = arith.mulf %58, %69 : vector<32x16xf32>
    %71 = arith.addf %70, %49 : vector<32x16xf32>
    %c0_36 = arith.constant 0 : index
    %c0_37 = arith.constant 0 : index
    %72 = vector.load %arg9[%c0_36, %c0_37] : memref<32x1xf32, #tpu.memory_space<vmem>>, vector<32x1xf32>
    %73 = vector.broadcast %72 : vector<32x1xf32> to vector<32x16xf32>
    %74 = arith.mulf %73, %71 : vector<32x16xf32>
    %cst_38 = arith.constant dense<0.000000e+00> : vector<16xf32>
    %75 = vector.multi_reduction <add>, %74, %cst_38 [0] : vector<32x16xf32> to vector<16xf32>
    %76 = vector.shape_cast %75 : vector<16xf32> to vector<1x16xf32>
    %c0_39 = arith.constant 0 : index
    %c0_40 = arith.constant 0 : index
    %77 = vector.load %arg10[%c0_39, %c0_40] : memref<1x1xf32, #tpu.memory_space<vmem>>, vector<1x1xf32>
    %78 = vector.broadcast %77 : vector<1x1xf32> to vector<1x16xf32>
    %79 = arith.addf %76, %78 : vector<1x16xf32>
    %c0_41 = arith.constant 0 : index
    %c0_42 = arith.constant 0 : index
    %80 = vector.load %arg11[%c0_41, %c0_42] : memref<1x16xf32, #tpu.memory_space<vmem>>, vector<1x16xf32>
    tpu.vector_store %arg11[%c0_41, %c0_42], %79 {strides = array<i32>} : memref<1x16xf32, #tpu.memory_space<vmem>>, vector<1x16xf32>,
    return
  }
  func.func @transform_0(%arg0: i32) -> (i32, i32) {
    %c0_i32 = arith.constant 0 : i32
    %c0_i32_0 = arith.constant 0 : i32
    return %c0_i32, %arg0 : i32, i32
  }
  func.func @transform_1(%arg0: i32) -> (i32, i32) {
    %c0_i32 = arith.constant 0 : i32
    %c0_i32_0 = arith.constant 0 : i32
    return %c0_i32, %arg0 : i32, i32
  }
  func.func @transform_2(%arg0: i32) -> (i32, i32) {
    %c0_i32 = arith.constant 0 : i32
    %c0_i32_0 = arith.constant 0 : i32
    %c0_i32_1 = arith.constant 0 : i32
    return %c0_i32, %c0_i32_0 : i32, i32
  }
  func.func @transform_3(%arg0: i32) -> (i32, i32) {
    %c0_i32 = arith.constant 0 : i32
    %c0_i32_0 = arith.constant 0 : i32
    %c0_i32_1 = arith.constant 0 : i32
    return %c0_i32, %c0_i32_0 : i32, i32
  }
  func.func @transform_4(%arg0: i32) -> (i32, i32) {
    %c0_i32 = arith.constant 0 : i32
    %c0_i32_0 = arith.constant 0 : i32
    %c0_i32_1 = arith.constant 0 : i32
    return %c0_i32, %c0_i32_0 : i32, i32
  }
  func.func @transform_5(%arg0: i32) -> (i32, i32) {
    %c0_i32 = arith.constant 0 : i32
    %c0_i32_0 = arith.constant 0 : i32
    %c0_i32_1 = arith.constant 0 : i32
    return %c0_i32, %c0_i32_0 : i32, i32
  }
  func.func @transform_6(%arg0: i32) -> (i32, i32, i32) {
    %c0_i32 = arith.constant 0 : i32
    %c0_i32_0 = arith.constant 0 : i32
    %c0_i32_1 = arith.constant 0 : i32
    %c0_i32_2 = arith.constant 0 : i32
    return %c0_i32, %c0_i32_0, %c0_i32_1 : i32, i32, i32
  }
  func.func @transform_7(%arg0: i32) -> (i32, i32, i32) {
    %c0_i32 = arith.constant 0 : i32
    %c0_i32_0 = arith.constant 0 : i32
    %c0_i32_1 = arith.constant 0 : i32
    %c0_i32_2 = arith.constant 0 : i32
    return %c0_i32, %c0_i32_0, %c0_i32_1 : i32, i32, i32
  }
  func.func @transform_8(%arg0: i32) -> (i32, i32) {
    %c0_i32 = arith.constant 0 : i32
    %c0_i32_0 = arith.constant 0 : i32
    %c0_i32_1 = arith.constant 0 : i32
    return %c0_i32, %c0_i32_0 : i32, i32
  }
  func.func @transform_9(%arg0: i32) -> (i32, i32) {
    %c0_i32 = arith.constant 0 : i32
    %c0_i32_0 = arith.constant 0 : i32
    %c0_i32_1 = arith.constant 0 : i32
    return %c0_i32, %c0_i32_0 : i32, i32
  }
  func.func @transform_10(%arg0: i32) -> (i32, i32) {
    %c0_i32 = arith.constant 0 : i32
    %c0_i32_0 = arith.constant 0 : i32
    return %c0_i32, %arg0 : i32, i32
  }
}

</mosaic_0001>

<bundles_post_ra>
// kernel: _head_forward_impl.1
= control target key start
LH: loop header
LB: loop body
LE: loop exit
PB: predicated region body
PF: predicated region fallthrough
CT: control target
= control target key end

     0   :  { %vm47_vm0 = vcmask 261120   ;;  %vm145_vm1 = vcmask 15360   ;;  %vm158_vm2 = vcmask 1041408   ;;  %v1079_v12 = vmov 0   ;;  %s1339_s1 = inlined_call_operand.vmem [shape: f32[32,2], index: 1, kind: input, shape index: {}]   ;;  %s1340_s4 = inlined_call_operand.vmem [shape: f32[32,32], index: 4, kind: input, shape index: {}]   ;;  %s1341_s2 = inlined_call_operand.vmem [shape: f32[2,16], index: 2, kind: input, shape index: {}]   ;;  %s1342_s0 = inlined_call_operand.vmem [shape: f32[8,16], index: 0, kind: input, shape index: {}]   ;;  %s1343_s5 = inlined_call_operand.vmem [shape: f32[32,1], index: 5, kind: input, shape index: {}]   ;;  %s1344_s9 = inlined_call_operand.<no memory space> [shape: f32[1,1], index: 9, kind: input, shape index: {}]   ;;  %s1345_s7 = inlined_call_operand.vmem [shape: f32[2,32,1], index: 7, kind: input, shape index: {}]   ;;  %s1346_s8 = inlined_call_operand.vmem [shape: f32[32,1], index: 8, kind: input, shape index: {}]   ;;  %s1347_s3 = inlined_call_operand.vmem [shape: f32[32,8], index: 3, kind: input, shape index: {}]   ;;  %s1348_s6 = inlined_call_operand.vmem [shape: f32[2,32,32], index: 6, kind: input, shape index: {}]   ;;  %s1349_s10 = inlined_call_operand.vmem [shape: f32[1,16], index: 10, kind: output, shape index: {}]  }
   0x1   :  { %v38_v0 = vld [vmem:[%s1339_s1] sm:$0xff]  ;;  %v39_v1 = vld [vmem:[%s1339_s1 + $0x8] sm:$0xff]  ;;  %v40_v2 = vld [vmem:[%s1339_s1 + $0x10] sm:$0xff]  ;;  %1071 = vset.pattern.permute.xlu0 %v1079_v12  ;;  %1072 = vset.pattern.permute.xlu1 %v1079_v12  ;;  %v15_v15 = vstv %s1344_s9  ;;  %vm348_vm3 = vcmask 64512   ;;  %vm486_vm4 = vcmask 130048   ;;  %vm893_vm5 = vcmask 122880  }
   0x2   :  { %v1038_v3 = vpack.c.bf16 %v39_v1, %v38_v0  ;;  %v41_v4 = vld [vmem:[%s1339_s1 + $0x18] sm:$0xff]  ;;  %v43_v5 = vld [vmem:[%s1340_s4] sm:$0xff]  ;;  %988 = vmatprep.mubr.msk.f32.mxu1 %vm145_vm1, %v38_v0  ;;  %v44_v8 = vld [vmem:[%s1340_s4 + $0x8] sm:$0xff]  ;;  %16 = vst [vmem:[#allocation2] sm:$0x1] %v15_v15 }
   0x3   :  { %v1042_v6 = vpack.c.bf16 %v41_v4, %v40_v2  ;;  %980 = vmatprep.mubr.msk.f32.mxu0 %vm47_vm0, %v43_v5  ;;  %v42_v7 = vld [vmem:[%s1341_s2] sm:$0x3]  ;;  %v45_v9 = vld [vmem:[%s1340_s4 + $0x10] sm:$0xff]  ;;  %v46_v10 = vld [vmem:[%s1340_s4 + $0x18] sm:$0xff] }
   0x4   :  { %1039 = vmatprep.subr.bf16.mxu0 %v1038_v3  ;;  %986 = vmatprep.subr.msk.mxu1 %vm158_vm2, %v42_v7  ;;  %v37_v11 = vld [vmem:[%s1342_s0] sm:$0xff]  ;;  %v448_v14 = vld [vmem:[%s1343_s5 + $0x10] sm:$0xff]  ;;  %v447_v16 = vld [vmem:[%s1343_s5 + $0x8] sm:$0xff] }
   0x5   :  { %1041 = vmatpush3.bf16.msra.mxu0 %v1038_v3  ;;  %987 = vmatpush3.msk.msra.mxu1 %vm158_vm2, %v42_v7  ;;  %v446_v13 = vld [vmem:[%s1343_s5] sm:$0xff]  ;;  %v449_v17 = vld [vmem:[%s1343_s5 + $0x18] sm:$0xff]  ;;  %v518_v19 = vld [vmem:[%s1345_s7 + $0x8] sm:$0xff] }
   0x6   :  { %1043 = vmatprep.subr.bf16.mxu0 %v1042_v6  ;;  %989 = vmatmul.mubr.msk.f32.vlgmr.msra.gmra.mrb[0].mxu1 %vm145_vm1, %v39_v1  ;;  %v517_v18 = vld [vmem:[%s1345_s7] sm:$0xff]  ;;  %v519_v20 = vld [vmem:[%s1345_s7 + $0x10] sm:$0xff]  ;;  %v520_v21 = vld [vmem:[%s1345_s7 + $0x18] sm:$0xff] }
   0x7   :  { %994 = vmatprep.subr.msk.mxu1 %vm158_vm2, %v42_v7  ;;  %991 = vmatprep.mubr.msk.f32.mxu1 %vm145_vm1, %v40_v2  ;;  %v925_v22 = vld [vmem:[%s1345_s7 + $0x20] sm:$0xff]  ;;  %v926_v23 = vld [vmem:[%s1345_s7 + $0x28] sm:$0xff]  ;;  %v927_v24 = vld [vmem:[%s1345_s7 + $0x30] sm:$0xff] }
   0x8   :  { %995 = vmatpush3.msk.msra.mxu1 %vm158_vm2, %v42_v7  ;;  %452 = vperm.xlu0 %1071, %v446_v13   ;;  %v928_v25 = vld [vmem:[%s1345_s7 + $0x38] sm:$0xff]  ;;  %v841_v26 = vld [vmem:[%s1346_s8] sm:$0xff]  ;;  %v842_v27 = vld [vmem:[%s1346_s8 + $0x8] sm:$0xff] }
   0x9   :  { %1045 = vmatpush3.bf16.msra.mxu0 %v1042_v6  ;;  %1002 = vmatprep.subr.mxu1 %v37_v11  ;;  %v843_v28 = vld [vmem:[%s1346_s8 + $0x10] sm:$0xff]  ;;  %v844_v29 = vld [vmem:[%s1346_s8 + $0x18] sm:$0xff]  ;;  %v882_v30 = vld [vmem:[#allocation2] sm:$0x1] }
   0xa   :  { %992 = vmatmul.mubr.msk.f32.gmra.mrb[2].mxu1 %vm145_vm1, %v41_v4  ;;  %462 = vperm.xlu1 %1072, %v448_v14   ;;  %v344_v39 = vld [vmem:[%s1347_s3] sm:$0xff]  ;;  %v345_v40 = vld [vmem:[%s1347_s3 + $0x8] sm:$0xff]  ;;  %v346_v41 = vld [vmem:[%s1347_s3 + $0x10] sm:$0xff] }
   0xb   :  { %v347_v42 = vld [vmem:[%s1347_s3 + $0x18] sm:$0xff]  ;;  %v513_v43 = vld [vmem:[%s1348_s6] sm:$0xff] }
   0xc   :  { %981 = vmatmul.mubr.msk.f32.vlgmr.msra.gmra.mrb[0].mxu0 %vm47_vm0, %v44_v8  ;;  %457 = vperm.xlu0 %1071, %v447_v16  }
   0xd   :  { %983 = vmatprep.mubr.msk.f32.mxu0 %vm47_vm0, %v45_v9 }
   0xe   :  { %467 = vperm.xlu1 %1072, %v449_v17  }
  0x10   :  { %984 = vmatmul.mubr.msk.f32.gmra.mrb[2].mxu0 %vm47_vm0, %v46_v10  ;;  %523 = vperm.xlu0 %1071, %v517_v18  }
  0x11   :  { %1018 = vmatprep.mubr.msk.f32.mxu0 %vm47_vm0, %v513_v43 }
  0x12   :  { %528 = vperm.xlu1 %1072, %v518_v19  }
  0x14   :  { %533 = vperm.xlu0 %1071, %v519_v20  }
  0x16   :  { %538 = vperm.xlu1 %1072, %v520_v21  }
  0x18   :  { %688 = vperm.xlu0 %1071, %v925_v22  }
  0x1a   :  { %693 = vperm.xlu1 %1072, %v926_v23  }
  0x1c   :  { %698 = vperm.xlu0 %1071, %v927_v24  }
  0x1e   :  { %703 = vperm.xlu1 %1072, %v928_v25  }
  0x20   :  { %847 = vperm.xlu0 %1071, %v841_v26  }
  0x22   :  { %852 = vperm.xlu1 %1072, %v842_v27  }
  0x24   :  { %857 = vperm.xlu0 %1071, %v843_v28  }
  0x26   :  { %862 = vperm.xlu1 %1072, %v844_v29  }
  0x28   :  { %885 = vperm.xlu0 %1071, %v882_v30  }
  0x87   :  { %v453_v44 = vpop.permute.xlu0 %452 }
  0x89   :  { %v463_v45 = vpop.permute.xlu1 %462 }
  0x8b   :  { %v458_v46 = vpop.permute.xlu0 %457 }
  0x8d   :  { %v468_v52 = vpop.permute.xlu1 %467 }
  0xd9   :  { %v1228_v31 = vpop.f32.mrb[0].mxu1 }
  0xda   :  { %v1230_v32 = vpop.f32.mrb[1].mxu1 }
  0xdd   :  { %v1232_v33 = vpop.f32.mrb[2].mxu1 }
  0xde   :  { %v1234_v34 = vpop.f32.mrb[3].mxu1 }
  0xdf   :  { %v982_v35 = vpop.f32.mrb[0].mxu0 }
  0xe0   :  { %v126_v36 = vpop.f32.mrb[1].mxu0 }
  0xe1   :  { %996 = vmatprep.mubr.msk.f32.mxu1 %vm145_vm1, %v126_v36  ;;  %v923_v36 = vld [vmem:[%s1348_s6 + $0x30] sm:$0xff] }
  0xe2   :  { %997 = vmatmul.mubr.msk.f32.vlgmr.msra.gmra.mrb[4].mxu1 %vm145_vm1, %v982_v35 }
  0xe3   :  { %v985_v37 = vpop.f32.mrb[2].mxu0  ;;  %1003 = vmatpush3.msra.mxu1 %v37_v11 }
  0xe4   :  { %v136_v38 = vpop.f32.mrb[3].mxu0 }
  0xe5   :  { %999 = vmatprep.mubr.msk.f32.mxu1 %vm145_vm1, %v136_v38  ;;  %v524_v38 = vpop.permute.xlu0 %523 }
  0xe6   :  { %1000 = vmatmul.mubr.msk.f32.gmra.mrb[6].mxu1 %vm145_vm1, %v985_v37  ;;  %v529_v37 = vpop.permute.xlu1 %528 }
  0xe7   :  { %1004 = vmatprep.mubr.msk.f32.mxu1 %vm348_vm3, %v344_v39 }
  0xea   :  { %1005 = vmatmul.mubr.msk.f32.vlgmr.msra.gmra.mrb[4].mxu1 %vm348_vm3, %v345_v40 }
  0xeb   :  { %1007 = vmatprep.mubr.msk.f32.mxu1 %vm348_vm3, %v346_v41 }
  0xee   :  { %1008 = vmatmul.mubr.msk.f32.gmra.mrb[6].mxu1 %vm348_vm3, %v347_v42 }
  0xef   :  { %1035 = vmatprep.mubr.msk.f32.mxu1 %vm47_vm0, %v923_v36 }
 0x1bd   :  { %v1006_v47 = vpop.f32.mrb[4].mxu1 }
 0x1be   :  { %v471_v48 = vadd.f32 %v1006_v47, %v458_v46  ;;  %v427_v49 = vpop.f32.mrb[5].mxu1  ;;  %v534_v47 = vpop.permute.xlu0 %533 }
 0x1bf   :  { %v470_v50 = vadd.f32 %v453_v44, %v427_v49  ;;  %v539_v44 = vpop.permute.xlu1 %538 }
 0x1c0   :  { %v475_v51 = vmul.f32 %v471_v48, %v471_v48 }
 0x1c1   :  { %v474_v53 = vmul.f32 %v470_v50, %v470_v50  ;;  %v1009_v54 = vpop.f32.mrb[6].mxu1 }
 0x1c2   :  { %v479_v55 = vmul.f32 %v475_v51, %v471_v48  ;;  %v473_v56 = vadd.f32 %v1009_v54, %v468_v52  ;;  %v437_v57 = vpop.f32.mrb[7].mxu1 }
 0x1c3   :  { %v478_v58 = vmul.f32 %v474_v53, %v470_v50  ;;  %v472_v59 = vadd.f32 %v463_v45, %v437_v57 }
 0x1c4   :  { %v483_v60 = vand.u32 2147483647, %v479_v55  ;;  %v477_v61 = vmul.f32 %v473_v56, %v473_v56 }
 0x1c5   :  { %v482_v62 = vand.u32 2147483647, %v478_v58  ;;  %v476_v63 = vmul.f32 %v472_v59, %v472_v59 }
 0x1c6   :  { %v488_v0 = vsel %vm486_vm4, %v483_v60, -inf  ;;  %v481_v1 = vmul.f32 %v477_v61, %v473_v56 }
 0x1c7   :  { %v487_v2 = vsel %vm486_vm4, %v482_v62, -inf  ;;  %v480_v3 = vmul.f32 %v476_v63, %v472_v59 }
 0x1c8   :  { %v491_v4 = vmax.f32 %v487_v2, %v488_v0  ;;  %v485_v5 = vand.u32 2147483647, %v481_v1 }
 0x1c9   :  { %v484_v6 = vand.u32 2147483647, %v480_v3 }
 0x1ca   :  { %v490_v7 = vsel %vm486_vm4, %v485_v5, -inf }
 0x1cb   :  { %v489_v8 = vsel %vm486_vm4, %v484_v6, -inf }
 0x1cc   :  { %v492_v9 = vmax.f32 %v489_v8, %v490_v7 }
 0x1ce   :  { %v493_v10 = vmax.f32 %v491_v4, %v492_v9 }
 0x1d0   :  { %v494_v11 = vrot.slane %v493_v10, 4 }
 0x1d2   :  { %v495_v12 = vmax.f32 %v493_v10, %v494_v11 }
 0x1d4   :  { %v496_v13 = vrot.slane %v495_v12, 2 }
 0x1d6   :  { %v497_v14 = vmax.f32 %v495_v12, %v496_v13 }
 0x1d8   :  { %v498_v15 = vrot.slane %v497_v14, 1 }
 0x1da   :  { %v499_v16 = vmax.f32 %v497_v14, %v498_v15 }
 0x1dc   :  { %v500_v17 = vmax.f32 %v499_v16, 1e-38 }
 0x1de   :  { %1073 = vrcp.f32 %v500_v17 }
 0x1e8   :  { %v1074_v18 = vpop.eup %1073 }
 0x1e9   :  { %v502_v19 = vmul.f32 %v1074_v18, %v500_v17 }
 0x1eb   :  { %v503_v20 = vsub.f32 2.0, %v502_v19 }
 0x1ed   :  { %v504_v21 = vmul.f32 %v1074_v18, %v503_v20 }
 0x1ef   :  { %v507_v22 = vmul.f32 %v504_v21, %v480_v3  ;;  %v505_v23 = vmul.f32 %v504_v21, %v478_v58  ;;  %v506_v24 = vmul.f32 %v504_v21, %v479_v55  ;;  %v508_v25 = vmul.f32 %v504_v21, %v481_v1 }
 0x1f1   :  { %v1261_v26 = vadd.f32 %v505_v23, %v1230_v32  ;;  %v1264_v27 = vadd.f32 %v1228_v31, %v506_v24  ;;  %v1267_v28 = vadd.f32 %v507_v22, %v1234_v34  ;;  %v1270_v29 = vadd.f32 %v1232_v33, %v508_v25  ;;  %v514_v31 = vld [vmem:[%s1348_s6 + $0x8] sm:$0xff]  ;;  %v515_v32 = vld [vmem:[%s1348_s6 + $0x10] sm:$0xff]  ;;  %v516_v33 = vld [vmem:[%s1348_s6 + $0x18] sm:$0xff] }
 0x1f2   :  { %v921_v34 = vld [vmem:[%s1348_s6 + $0x20] sm:$0xff]  ;;  %v922_v25 = vld [vmem:[%s1348_s6 + $0x28] sm:$0xff] }
 0x1f3   :  { %v1046_v30 = vpack.c.bf16 %v1264_v27, %v1261_v26  ;;  %v1050_v35 = vpack.c.bf16 %v1270_v29, %v1267_v28 }
 0x1f5   :  { %1047 = vmatprep.subr.bf16.mxu0 %v1046_v30 }
 0x1f6   :  { %1049 = vmatpush3.bf16.msra.mxu0 %v1046_v30 }
 0x1f7   :  { %1051 = vmatprep.subr.bf16.mxu0 %v1050_v35 }
 0x1fa   :  { %1053 = vmatpush3.bf16.msra.mxu0 %v1050_v35 }
 0x1fd   :  { %1019 = vmatmul.mubr.msk.f32.vlgmr.msra.gmra.mrb[4].mxu0 %vm47_vm0, %v514_v31 }
 0x1fe   :  { %1021 = vmatprep.mubr.msk.f32.mxu0 %vm47_vm0, %v515_v32 }
 0x201   :  { %1022 = vmatmul.mubr.msk.f32.gmra.mrb[6].mxu0 %vm47_vm0, %v516_v33 }
 0x202   :  { %1032 = vmatprep.mubr.msk.f32.mxu0 %vm47_vm0, %v921_v34 }
 0x2d0   :  { %v1020_v39 = vpop.f32.mrb[4].mxu0 }
 0x2d1   :  { %v625_v40 = vadd.f32 %v1020_v39, %v529_v37  ;;  %v619_v41 = vpop.f32.mrb[5].mxu0 }
 0x2d2   :  { %v620_v42 = vadd.f32 %v619_v41, %v524_v38 }
 0x2d3   :  { %v639_v43 = vmul.f32 %v625_v40, %v625_v40 }
 0x2d4   :  { %v638_v45 = vmul.f32 %v620_v42, %v620_v42  ;;  %v1023_v46 = vpop.f32.mrb[6].mxu0 }
 0x2d5   :  { %v643_v48 = vmul.f32 %v639_v43, %v625_v40  ;;  %v635_v49 = vadd.f32 %v1023_v46, %v539_v44  ;;  %v629_v50 = vpop.f32.mrb[7].mxu0 }
 0x2d6   :  { %v642_v51 = vmul.f32 %v638_v45, %v620_v42  ;;  %v630_v52 = vadd.f32 %v629_v50, %v534_v47 }
 0x2d7   :  { %v647_v53 = vand.u32 2147483647, %v643_v48  ;;  %v641_v54 = vmul.f32 %v635_v49, %v635_v49 }
 0x2d8   :  { %v646_v55 = vand.u32 2147483647, %v642_v51  ;;  %v640_v56 = vmul.f32 %v630_v52, %v630_v52 }
 0x2d9   :  { %v651_v57 = vsel %vm486_vm4, %v647_v53, -inf  ;;  %v645_v58 = vmul.f32 %v641_v54, %v635_v49 }
 0x2da   :  { %v650_v59 = vsel %vm486_vm4, %v646_v55, -inf  ;;  %v644_v60 = vmul.f32 %v640_v56, %v630_v52 }
 0x2db   :  { %v654_v61 = vmax.f32 %v650_v59, %v651_v57  ;;  %v649_v62 = vand.u32 2147483647, %v645_v58 }
 0x2dc   :  { %v648_v63 = vand.u32 2147483647, %v644_v60 }
 0x2dd   :  { %v653_v0 = vsel %vm486_vm4, %v649_v62, -inf }
 0x2de   :  { %v652_v1 = vsel %vm486_vm4, %v648_v63, -inf }
 0x2df   :  { %v655_v2 = vmax.f32 %v652_v1, %v653_v0 }
 0x2e1   :  { %v656_v3 = vmax.f32 %v654_v61, %v655_v2 }
 0x2e3   :  { %v657_v4 = vrot.slane %v656_v3, 4 }
 0x2e5   :  { %v658_v5 = vmax.f32 %v656_v3, %v657_v4 }
 0x2e7   :  { %v659_v6 = vrot.slane %v658_v5, 2 }
 0x2e9   :  { %v660_v7 = vmax.f32 %v658_v5, %v659_v6 }
 0x2eb   :  { %v661_v8 = vrot.slane %v660_v7, 1 }
 0x2ed   :  { %v662_v9 = vmax.f32 %v660_v7, %v661_v8 }
 0x2ef   :  { %v663_v10 = vmax.f32 %v662_v9, 1e-38 }
 0x2f1   :  { %1075 = vrcp.f32 %v663_v10 }
 0x2fb   :  { %v1076_v11 = vpop.eup %1075 }
 0x2fc   :  { %v665_v12 = vmul.f32 %v1076_v11, %v663_v10 }
 0x2fe   :  { %v666_v13 = vsub.f32 2.0, %v665_v12 }
 0x300   :  { %v667_v14 = vmul.f32 %v1076_v11, %v666_v13 }
 0x302   :  { %v670_v15 = vmul.f32 %v667_v14, %v644_v60  ;;  %v668_v16 = vmul.f32 %v667_v14, %v642_v51  ;;  %v669_v17 = vmul.f32 %v667_v14, %v643_v48  ;;  %v671_v18 = vmul.f32 %v667_v14, %v645_v58 }
 0x304   :  { %v1301_v19 = vadd.f32 %v670_v15, %v1267_v28  ;;  %v1304_v20 = vadd.f32 %v668_v16, %v1261_v26  ;;  %v1307_v21 = vadd.f32 %v669_v17, %v1264_v27  ;;  %v1310_v22 = vadd.f32 %v671_v18, %v1270_v29  ;;  %v924_v26 = vld [vmem:[%s1348_s6 + $0x38] sm:$0xff]  ;;  %v689_v27 = vpop.permute.xlu0 %688  ;;  %v694_v28 = vpop.permute.xlu1 %693 }
 0x306   :  { %v1054_v23 = vpack.c.bf16 %v1307_v21, %v1304_v20  ;;  %v1058_v24 = vpack.c.bf16 %v1310_v22, %v1301_v19 }
 0x308   :  { %1055 = vmatprep.subr.bf16.mxu0 %v1054_v23  ;;  %1062 = vmatprep.subr.bf16.mxu1 %v1054_v23  ;;  %v699_v29 = vpop.permute.xlu0 %698  ;;  %v704_v30 = vpop.permute.xlu1 %703 }
 0x309   :  { %1057 = vmatpush3.bf16.msra.mxu0 %v1054_v23  ;;  %1064 = vmatpush3.bf16.msra.mxu1 %v1054_v23 }
 0x30a   :  { %1059 = vmatprep.subr.bf16.mxu0 %v1058_v24  ;;  %1063 = vmatprep.subr.bf16.mxu1 %v1058_v24 }
 0x30c   :  { %v848_v4 = vpop.permute.xlu0 %847  ;;  %v853_v6 = vpop.permute.xlu1 %852 }
 0x30d   :  { %1061 = vmatpush3.bf16.msra.mxu0 %v1058_v24  ;;  %1065 = vmatpush3.bf16.msra.mxu1 %v1058_v24 }
 0x310   :  { %1033 = vmatmul.mubr.msk.f32.vlgmr.msra.gmra.mrb[8].mxu0 %vm47_vm0, %v922_v25  ;;  %1036 = vmatmul.mubr.msk.f32.vlgmr.msra.gmra.mrb[8].mxu1 %vm47_vm0, %v924_v26  ;;  %v858_v15 = vpop.permute.xlu0 %857  ;;  %v863_v23 = vpop.permute.xlu1 %862 }
 0x3e3   :  { %v1034_v35 = vpop.f32.mrb[8].mxu0  ;;  %v1037_v31 = vpop.f32.mrb[8].mxu1 }
 0x3e4   :  { %v790_v32 = vadd.f32 %v1034_v35, %v694_v28  ;;  %v800_v33 = vadd.f32 %v1037_v31, %v704_v30  ;;  %v784_v34 = vpop.f32.mrb[9].mxu0  ;;  %v794_v36 = vpop.f32.mrb[9].mxu1 }
 0x3e5   :  { %v785_v37 = vadd.f32 %v784_v34, %v689_v27  ;;  %v795_v38 = vadd.f32 %v794_v36, %v699_v29  ;;  %v888_v29 = vlaneseq  ;;  %v886_v34 = vpop.permute.xlu0 %885 }
 0x3e6   :  { %v804_v39 = vmul.f32 %v790_v32, %v790_v32  ;;  %v806_v40 = vmul.f32 %v800_v33, %v800_v33 }
 0x3e7   :  { %v803_v41 = vmul.f32 %v785_v37, %v785_v37  ;;  %v805_v42 = vmul.f32 %v795_v38, %v795_v38 }
 0x3e8   :  { %v808_v43 = vmul.f32 %v804_v39, %v790_v32  ;;  %v810_v44 = vmul.f32 %v806_v40, %v800_v33 }
 0x3e9   :  { %v807_v45 = vmul.f32 %v803_v41, %v785_v37  ;;  %v809_v46 = vmul.f32 %v805_v42, %v795_v38 }
 0x3ea   :  { %v812_v47 = vand.u32 2147483647, %v808_v43  ;;  %v814_v48 = vand.u32 2147483647, %v810_v44 }
 0x3eb   :  { %v811_v49 = vand.u32 2147483647, %v807_v45  ;;  %v813_v50 = vand.u32 2147483647, %v809_v46 }
 0x3ec   :  { %v816_v51 = vsel %vm486_vm4, %v812_v47, -inf  ;;  %v818_v52 = vsel %vm486_vm4, %v814_v48, -inf }
 0x3ed   :  { %v815_v53 = vsel %vm486_vm4, %v811_v49, -inf  ;;  %v817_v54 = vsel %vm486_vm4, %v813_v50, -inf }
 0x3ee   :  { %v819_v55 = vmax.f32 %v815_v53, %v816_v51  ;;  %v820_v56 = vmax.f32 %v817_v54, %v818_v52 }
 0x3f0   :  { %v821_v57 = vmax.f32 %v819_v55, %v820_v56 }
 0x3f2   :  { %v822_v58 = vrot.slane %v821_v57, 4 }
 0x3f4   :  { %v823_v59 = vmax.f32 %v821_v57, %v822_v58 }
 0x3f6   :  { %v824_v60 = vrot.slane %v823_v59, 2 }
 0x3f8   :  { %v825_v61 = vmax.f32 %v823_v59, %v824_v60 }
 0x3fa   :  { %v826_v62 = vrot.slane %v825_v61, 1 }
 0x3fc   :  { %v827_v63 = vmax.f32 %v825_v61, %v826_v62 }
 0x3fe   :  { %v828_v0 = vmax.f32 %v827_v63, 1e-38 }
 0x400   :  { %1077 = vrcp.f32 %v828_v0 }
 0x40a   :  { %v1078_v1 = vpop.eup %1077 }
 0x40b   :  { %v830_v2 = vmul.f32 %v1078_v1, %v828_v0 }
 0x40d   :  { %v831_v3 = vsub.f32 2.0, %v830_v2 }
 0x40f   :  { %v832_v5 = vmul.f32 %v1078_v1, %v831_v3 }
 0x411   :  { %v833_v7 = vmul.f32 %v832_v5, %v807_v45  ;;  %v834_v8 = vmul.f32 %v832_v5, %v808_v43  ;;  %v835_v9 = vmul.f32 %v832_v5, %v809_v46  ;;  %v836_v10 = vmul.f32 %v832_v5, %v810_v44 }
 0x413   :  { %v837_v11 = vadd.f32 %v833_v7, %v1304_v20  ;;  %v838_v12 = vadd.f32 %v834_v8, %v1307_v21  ;;  %v839_v13 = vadd.f32 %v835_v9, %v1301_v19  ;;  %v840_v14 = vadd.f32 %v836_v10, %v1310_v22 }
 0x414   :  { %v889_v22 = vshrl.u32 %v888_v29, 7 }
 0x415   :  { %v865_v16 = vmul.f32 %v848_v4, %v837_v11  ;;  %v866_v17 = vmul.f32 %v853_v6, %v838_v12  ;;  %v867_v18 = vmul.f32 %v858_v15, %v839_v13  ;;  %v868_v24 = vmul.f32 %v863_v23, %v840_v14 }
 0x416   :  { %v890_v32 = vsub.s32 0, %v889_v22 }
 0x417   :  { %v869_v25 = vsel %vm486_vm4, %v865_v16, 0.0  ;;  %v870_v26 = vsel %vm486_vm4, %v866_v17, 0.0  ;;  %v872_v28 = vsel %vm486_vm4, %v867_v18, 0.0  ;;  %v874_v21 = vsel %vm486_vm4, %v868_v24, 0.0 }
 0x418   :  { %v871_v27 = vadd.f32 %v870_v26, %v869_v25  ;;  %v891_v37 = vrot.slane %v886_v34, %v890_v32 }
 0x41a   :  { %v873_v20 = vadd.f32 %v872_v28, %v871_v27 }
 0x41c   :  { %v875_v19 = vadd.f32 %v874_v21, %v873_v20 }
 0x41e   :  { %v876_v30 = vrot.slane %v875_v19, 4 }
 0x420   :  { %v877_v35 = vadd.f32 %v876_v30, %v875_v19 }
 0x422   :  { %v878_v31 = vrot.slane %v877_v35, 2 }
 0x424   :  { %v879_v33 = vadd.f32 %v878_v31, %v877_v35 }
 0x426   :  { %v880_v36 = vrot.slane %v879_v33, 1 }
 0x428   :  { %v881_v38 = vadd.f32 %v880_v36, %v879_v33 }
 0x42a   :  { %v892_v39 = vadd.f32 %v891_v37, %v881_v38 }
 0x42c   :  { %894 = vst.msk [vmem:[%s1349_s10] sm:$0x1] %vm893_vm5, %v892_v39 }

</bundles_post_ra>
